<compile_context>
chip_gen: v7x
topology: tpu7x:2x2x1
jax: 0.10.0
libtpu: 0.0.40
codegen_flags: <defaults>
</compile_context>

<pallas_src>
import functools

import jax
import jax.numpy as jnp
from jax.experimental import pallas as pl
from jax.experimental.pallas import tpu as pltpu

IN_FEATURES = 2
HIDDEN = 100
N_OUT = 11
H_PAD = 128      # padded hidden width (lane multiple) used for compute
L_PAD = 128      # padded logit width used for compute (softmax over 128 lanes)
NEG_BIG = -1e30


def ann_kernel(x_ref, w1_ref, b1_ref, w2_ref, b2_ref, o_ref):
    x = x_ref[...]                       # (TB, 2)   f32
    w1 = w1_ref[...]                     # (2, 128)  f32
    # First layer (K=2) on the VPU: two lane-broadcast FMAs, MXU stays free.
    h = x[:, 0:1] * w1[0:1, :] + x[:, 1:2] * w1[1:2, :] + b1_ref[...]
    h = jnp.maximum(h, 0.0)              # (TB, 128)
    # Second layer on the MXU (full 128-deep K, lane-dense 128-wide N).
    logits = jnp.dot(h, w2_ref[...], preferred_element_type=jnp.float32) + b2_ref[...]
    # Numerically stable softmax over 128 lanes; padded lanes carry a -1e30
    # bias so exp() underflows to exactly 0 and the sum is exact.
    m = jnp.max(logits, axis=-1, keepdims=True)
    e = jnp.exp(logits - m)
    denom = jnp.sum(e, axis=-1, keepdims=True)
    probs = e * pl.reciprocal(denom, approx=False)   # exact recip: 1e-5 tol
    # Narrow HBM writeback: store only the 11 live lanes (44 B/row vs 512 B).
    o_ref[...] = probs[:, :N_OUT]


def _round_up(n, m):
    return ((n + m - 1) // m) * m


def pad_params(w1, b1, w2, b2):
    """Pad weights/biases to lane-dense shapes ONCE (outside the hot path).

    Zero hidden padding is exact (zero rows/cols contribute nothing); the
    padded output bias is -1e30 so the extra logits vanish under softmax.
    """
    w1 = jnp.asarray(w1, jnp.float32)
    b1 = jnp.asarray(b1, jnp.float32).reshape(1, -1)
    w2 = jnp.asarray(w2, jnp.float32)
    b2 = jnp.asarray(b2, jnp.float32).reshape(1, -1)
    w1p = jnp.pad(w1, ((0, 0), (0, H_PAD - HIDDEN)))                    # (2, 128)
    b1p = jnp.pad(b1, ((0, 0), (0, H_PAD - HIDDEN)))                    # (1, 128)
    w2p = jnp.pad(w2, ((0, H_PAD - HIDDEN), (0, L_PAD - N_OUT)))        # (128, 128)
    b2p = jnp.pad(b2, ((0, 0), (0, L_PAD - N_OUT)),
                  constant_values=NEG_BIG)                              # (1, 128)
    return w1p, b1p, w2p, b2p


@functools.partial(jax.jit, static_argnames=("tb", "core_parallel"))
def ann_forward_padded(x, w1p, b1p, w2p, b2p, *, tb=2048, core_parallel=False):
    """x: (B, 2) f32; padded params from pad_params()."""
    x = jnp.asarray(x, jnp.float32)
    B = x.shape[0]

    if B <= tb:
        # Single batch block; block dims equal to the full array dims are
        # always legal, so no batch padding and no extra x copy.
        TB = B
        B_pad = B
    else:
        TB = tb                          # multiple of 8 by construction
        B_pad = _round_up(B, TB)

    if B_pad != B:
        x = jnp.pad(x, ((0, B_pad - B), (0, 0)))

    grid = (B_pad // TB,)
    cost = pl.CostEstimate(
        flops=B_pad * (2 * IN_FEATURES * H_PAD + 2 * H_PAD * L_PAD),
        transcendentals=B_pad * L_PAD,
        bytes_accessed=B_pad * (IN_FEATURES + N_OUT) * 4
        + (IN_FEATURES * H_PAD + H_PAD + H_PAD * L_PAD + L_PAD) * 4,
    )

    # "parallel" by default; CORE_PARALLEL is the v7x 2-TensorCore option.
    batch_sem = pltpu.CORE_PARALLEL if core_parallel else "parallel"

    out = pl.pallas_call(
        ann_kernel,
        out_shape=jax.ShapeDtypeStruct((B_pad, N_OUT), jnp.float32),
        grid_spec=pltpu.PrefetchScalarGridSpec(
            num_scalar_prefetch=0,
            grid=grid,
            in_specs=[
                pl.BlockSpec((TB, IN_FEATURES), lambda i: (i, 0)),  # x tile
                pl.BlockSpec((IN_FEATURES, H_PAD), lambda i: (0, 0)),  # W1 (resident)
                pl.BlockSpec((1, H_PAD), lambda i: (0, 0)),            # b1 (resident)
                pl.BlockSpec((H_PAD, L_PAD), lambda i: (0, 0)),        # W2 (resident)
                pl.BlockSpec((1, L_PAD), lambda i: (0, 0)),            # b2 (resident)
            ],
            out_specs=pl.BlockSpec((TB, N_OUT), lambda i: (i, 0)),     # narrow HBM out
        ),
        compiler_params=pltpu.CompilerParams(
            dimension_semantics=(batch_sem,),
            # Footprint at TB=2048: ~3 MiB intermediates + ~0.4 MiB buffered
            # I/O/weights; 32 MiB gives ample headroom on every generation
            # (incl. v5e's 16 MiB default scoped limit) without nearing
            # v7x's 64 MiB physical VMEM.
            vmem_limit_bytes=32 * 1024 * 1024,
        ),
        cost_estimate=cost,
    )(x, w1p, b1p, w2p, b2p)

    return out[:B] if B_pad != B else out


def ann_forward(x, w1, b1, w2, b2, *, tb=2048, core_parallel=False):
    """Convenience wrapper taking unpadded PyTorch-layout params."""
    w1p, b1p, w2p, b2p = pad_params(w1, b1, w2, b2)
    return ann_forward_padded(x, w1p, b1p, w2p, b2p, tb=tb,
                              core_parallel=core_parallel)


def init_params(key):
    # Deterministic init mimicking nn.Linear default: U(-1/sqrt(fan_in), +1/sqrt(fan_in))
    k1, k2, k3, k4 = jax.random.split(key, 4)
    bound1 = 1.0 / jnp.sqrt(2.0)
    bound2 = 1.0 / jnp.sqrt(float(HIDDEN))
    w1 = jax.random.uniform(k1, (IN_FEATURES, HIDDEN), jnp.float32, -bound1, bound1)
    b1 = jax.random.uniform(k2, (1, HIDDEN), jnp.float32, -bound1, bound1)
    w2 = jax.random.uniform(k3, (HIDDEN, N_OUT), jnp.float32, -bound2, bound2)
    b2 = jax.random.uniform(k4, (1, N_OUT), jnp.float32, -bound2, bound2)
    return w1, b1, w2, b2


def reference_forward(x, w1, b1, w2, b2):
    h = jnp.maximum(x @ w1 + b1, 0.0)
    logits = h @ w2 + b2
    return jax.nn.softmax(logits, axis=-1)


if __name__ == "__main__":
    key = jax.random.PRNGKey(0)
    kx, kp = jax.random.split(key)
    B = 8
    x = jax.random.normal(kx, (B, IN_FEATURES), jnp.float32)
    w1, b1, w2, b2 = init_params(kp)

    # Pad params once (hoisted out of the per-call path), then run the kernel.
    w1p, b1p, w2p, b2p = pad_params(w1, b1, w2, b2)
    out = ann_forward_padded(x, w1p, b1p, w2p, b2p)
    out = jax.block_until_ready(out)

    ref = reference_forward(x, w1, b1, w2, b2)
    assert out.shape == (B, N_OUT)
    assert jnp.allclose(out, ref, atol=1e-5, rtol=1e-5)
    assert jnp.allclose(jnp.sum(out, axis=-1), jnp.ones((B,)), atol=1e-5)

    print("KERNEL_OK")
</pallas_src>

<mosaic_0001>
module attributes {stable_mosaic.version = 11 : i64} {
  func.func @ann_kernel(%arg0: i32, %arg1: memref<8x2xf32, #tpu.memory_space<vmem>>, %arg2: memref<2x128xf32, #tpu.memory_space<vmem>>, %arg3: memref<1x128xf32, #tpu.memory_space<vmem>>, %arg4: memref<128x128xf32, #tpu.memory_space<vmem>>, %arg5: memref<1x128xf32, #tpu.memory_space<vmem>>, %arg6: memref<8x11xf32, #tpu.memory_space<vmem>>) attributes {dimension_semantics = [#tpu.dimension_semantics<parallel>], iteration_bounds = array<i64: 1>, scalar_prefetch = 0 : i64, scratch_operands = 0 : i64, tpu.core_type = #tpu.core_type<tc>, window_params = [{transform_indices = @transform_0, window_bounds = array<i64: 8, 2>}, {pipeline_mode = #tpu.pipeline_mode<synchronous>, transform_indices = @transform_1, window_bounds = array<i64: 2, 128>}, {pipeline_mode = #tpu.pipeline_mode<synchronous>, transform_indices = @transform_2, window_bounds = array<i64: 1, 128>}, {pipeline_mode = #tpu.pipeline_mode<synchronous>, transform_indices = @transform_3, window_bounds = array<i64: 128, 128>}, {pipeline_mode = #tpu.pipeline_mode<synchronous>, transform_indices = @transform_4, window_bounds = array<i64: 1, 128>}, {transform_indices = @transform_5, window_bounds = array<i64: 8, 11>}]} {
    %c0 = arith.constant 0 : index
    %c0_0 = arith.constant 0 : index
    %0 = vector.load %arg1[%c0, %c0_0] : memref<8x2xf32, #tpu.memory_space<vmem>>, vector<8x2xf32>
    %c0_1 = arith.constant 0 : index
    %c0_2 = arith.constant 0 : index
    %1 = vector.load %arg2[%c0_1, %c0_2] : memref<2x128xf32, #tpu.memory_space<vmem>>, vector<2x128xf32>
    %2 = vector.extract_strided_slice %0 {offsets = [0, 0], sizes = [8, 1], strides = [1, 1]} : vector<8x2xf32> to vector<8x1xf32>
    %3 = vector.extract_strided_slice %1 {offsets = [0, 0], sizes = [1, 128], strides = [1, 1]} : vector<2x128xf32> to vector<1x128xf32>
    %4 = vector.broadcast %2 : vector<8x1xf32> to vector<8x128xf32>
    %5 = vector.broadcast %3 : vector<1x128xf32> to vector<8x128xf32>
    %6 = arith.mulf %4, %5 : vector<8x128xf32>
    %7 = vector.extract_strided_slice %0 {offsets = [0, 1], sizes = [8, 1], strides = [1, 1]} : vector<8x2xf32> to vector<8x1xf32>
    %8 = vector.extract_strided_slice %1 {offsets = [1, 0], sizes = [1, 128], strides = [1, 1]} : vector<2x128xf32> to vector<1x128xf32>
    %9 = vector.broadcast %7 : vector<8x1xf32> to vector<8x128xf32>
    %10 = vector.broadcast %8 : vector<1x128xf32> to vector<8x128xf32>
    %11 = arith.mulf %9, %10 : vector<8x128xf32>
    %12 = arith.addf %6, %11 : vector<8x128xf32>
    %c0_3 = arith.constant 0 : index
    %c0_4 = arith.constant 0 : index
    %13 = vector.load %arg3[%c0_3, %c0_4] : memref<1x128xf32, #tpu.memory_space<vmem>>, vector<1x128xf32>
    %14 = vector.broadcast %13 : vector<1x128xf32> to vector<8x128xf32>
    %15 = arith.addf %12, %14 : vector<8x128xf32>
    %cst = arith.constant 0.000000e+00 : f32
    %16 = vector.broadcast %cst : f32 to vector<8x128xf32>
    %17 = arith.maximumf %15, %16 : vector<8x128xf32>
    %c0_5 = arith.constant 0 : index
    %c0_6 = arith.constant 0 : index
    %18 = vector.load %arg4[%c0_5, %c0_6] : memref<128x128xf32, #tpu.memory_space<vmem>>, vector<128x128xf32>
    %cst_7 = arith.constant dense<0.000000e+00> : vector<8x128xf32>
    %19 = tpu.matmul %17, %18, %cst_7 {dimension_numbers = #tpu.dot_dimension_numbers<[1], [0], [0], [1], [0, 0, 1, 1], [], []>} : vector<8x128xf32>, vector<128x128xf32>, vector<8x128xf32> -> vector<8x128xf32>
    %c0_8 = arith.constant 0 : index
    %c0_9 = arith.constant 0 : index
    %20 = vector.load %arg5[%c0_8, %c0_9] : memref<1x128xf32, #tpu.memory_space<vmem>>, vector<1x128xf32>
    %21 = vector.broadcast %20 : vector<1x128xf32> to vector<8x128xf32>
    %22 = arith.addf %19, %21 : vector<8x128xf32>
    %cst_10 = arith.constant dense<0xFF800000> : vector<8xf32>
    %23 = vector.multi_reduction <maximumf>, %22, %cst_10 [1] : vector<8x128xf32> to vector<8xf32>
    %24 = vector.shape_cast %23 : vector<8xf32> to vector<8x1xf32>
    %25 = vector.broadcast %24 : vector<8x1xf32> to vector<8x128xf32>
    %26 = arith.subf %22, %25 : vector<8x128xf32>
    %27 = math.exp %26 : vector<8x128xf32>
    %cst_11 = arith.constant dense<0.000000e+00> : vector<8xf32>
    %28 = vector.multi_reduction <add>, %27, %cst_11 [1] : vector<8x128xf32> to vector<8xf32>
    %29 = vector.shape_cast %28 : vector<8xf32> to vector<8x1xf32>
    %30 = tpu.reciprocal %29 : vector<8x1xf32> -> vector<8x1xf32>
    %31 = vector.broadcast %30 : vector<8x1xf32> to vector<8x128xf32>
    %32 = arith.mulf %27, %31 : vector<8x128xf32>
    %33 = vector.extract_strided_slice %32 {offsets = [0, 0], sizes = [8, 11], strides = [1, 1]} : vector<8x128xf32> to vector<8x11xf32>
    %c0_12 = arith.constant 0 : index
    %c0_13 = arith.constant 0 : index
    %34 = vector.load %arg6[%c0_12, %c0_13] : memref<8x11xf32, #tpu.memory_space<vmem>>, vector<8x11xf32>
    tpu.vector_store %arg6[%c0_12, %c0_13], %33 {strides = array<i32>} : memref<8x11xf32, #tpu.memory_space<vmem>>, vector<8x11xf32>,
    return
  }
  func.func @transform_0(%arg0: i32) -> (i32, i32) {
    %c0_i32 = arith.constant 0 : i32
    %c0_i32_0 = arith.constant 0 : i32
    return %arg0, %c0_i32 : i32, i32
  }
  func.func @transform_1(%arg0: i32) -> (i32, i32) {
    %c0_i32 = arith.constant 0 : i32
    %c0_i32_0 = arith.constant 0 : i32
    %c0_i32_1 = arith.constant 0 : i32
    return %c0_i32, %c0_i32_0 : i32, i32
  }
  func.func @transform_2(%arg0: i32) -> (i32, i32) {
    %c0_i32 = arith.constant 0 : i32
    %c0_i32_0 = arith.constant 0 : i32
    %c0_i32_1 = arith.constant 0 : i32
    return %c0_i32, %c0_i32_0 : i32, i32
  }
  func.func @transform_3(%arg0: i32) -> (i32, i32) {
    %c0_i32 = arith.constant 0 : i32
    %c0_i32_0 = arith.constant 0 : i32
    %c0_i32_1 = arith.constant 0 : i32
    return %c0_i32, %c0_i32_0 : i32, i32
  }
  func.func @transform_4(%arg0: i32) -> (i32, i32) {
    %c0_i32 = arith.constant 0 : i32
    %c0_i32_0 = arith.constant 0 : i32
    %c0_i32_1 = arith.constant 0 : i32
    return %c0_i32, %c0_i32_0 : i32, i32
  }
  func.func @transform_5(%arg0: i32) -> (i32, i32) {
    %c0_i32 = arith.constant 0 : i32
    %c0_i32_0 = arith.constant 0 : i32
    return %arg0, %c0_i32 : i32, i32
  }
}

</mosaic_0001>

<bundles_post_ra>
// kernel: ann_forward_padded.1
= control target key start
LH: loop header
LB: loop body
LE: loop exit
PB: predicated region body
PF: predicated region fallthrough
CT: control target
= control target key end

     0   :  { %10 = vsyncpa [#allocation3], 0  ;;  %s401_s0 = inlined_call_operand.vmem [shape: f32[8,2], index: 0, kind: input, shape index: {}]   ;;  %s402_s1 = inlined_call_operand.vmem [shape: f32[2,128], index: 1, kind: input, shape index: {}]   ;;  %s403_s2 = inlined_call_operand.vmem [shape: f32[1,128], index: 2, kind: input, shape index: {}]   ;;  %s404_s3 = inlined_call_operand.hbm [shape: f32[128,128], index: 3, kind: input, shape index: {}]   ;;  %s405_s4 = inlined_call_operand.vmem [shape: f32[1,128], index: 4, kind: input, shape index: {}]   ;;  %s406_s5 = inlined_call_operand.hbm [shape: f32[8,11], index: 5, kind: output, shape index: {}]  }
   0x1   :  { %11 = vsyncpa [#allocation4], 0  ;;  %s326_s18 = smov [#allocation2]   ;;  %s278_s22 = scalar_lea.hbm %s404_s3, 2048 }
   0x2   :  { %s23_s19 = sshll.u32 %s326_s18, 4  ;;  %p279_p0 = scmp.ne.s32.totalorder %s404_s3, %s278_s22  ;;  %s24_s19 = int_to_ptr.vmem [resolvable:$true] %s23_s19 }
   0x3   :  { %p282_p1 = scmp.lt.u32.totalorder %s278_s22, %s404_s3 }
   0x5   :  { %p284_p2 = pnand %p282_p1, %p279_p0 }
   0x7   :  { %287 = shalt.err (!%p284_p2)
}
   0x8   :  { %s288_s27 = scalar_lea.vmem %s24_s19, 2048  ;;  %p293_p4 = scmp.lt.s32.totalorder %s24_s19, %s24_s19 }
   0x9   :  { %p289_p3 = scmp.ne.s32.totalorder %s24_s19, %s288_s27  ;;  %p294_p5 = scmp.lt.s32.totalorder %s288_s27, %s288_s27 }
   0xb   :  { %p295_p6 = por %p294_p5, %p293_p4 }
   0xd   :  { %p296_p7 = pnand %p295_p6, %p289_p3 }
   0xf   :  { %299 = shalt.err (!%p296_p7)
}
  0x10   :  { %s327_s28 = smov 128   ;;  %s328_s29 = smov 8  }
  0x11   :  { %29 = dma.hbm_to_vmem [thread:$0]  %s404_s3, 2048, %s24_s19, [#allocation3], %s327_s28, %s327_s28, %s328_s29  }
  0x12   :  { %322 = dma.done.wait [#allocation3], 2048  }
  0x13   :  { %323 = vsyncadd [#allocation3], 4294965248  ;;  %v329_v0 = vmov 0   ;;  %v330_v1 = vmov 0.0|0.0   ;;  %v35_v2 = vld [vmem:[%s401_s0] sm:$0xff]  ;;  %v67_v4 = vld [vmem:[#allocation2 + $0x8] sm:$0xff]  ;;  %v42_v29 = vlaneseq }
  0x14   :  { %272 = vset.pattern.permute.xlu0 %v329_v0  ;;  %239 = vmatprep.subr.bf16.mxu0 %v330_v1  ;;  %v66_v3 = vld [vmem:[#allocation2] sm:$0xff]  ;;  %v68_v6 = vld [vmem:[#allocation2 + $0x10] sm:$0xff]  ;;  %v69_v7 = vld [vmem:[#allocation2 + $0x18] sm:$0xff]  ;;  %v331_v11 = vmov 1   ;;  %vm332_vm0 = vmmov 0   ;;  %v333_v15 = vmov 0.0  }
  0x15   :  { %39 = vperm.xlu0 %272, %v35_v2   ;;  %v240_v5 = vpack.c.bf16 %v67_v4, %v66_v3  ;;  %v243_v8 = vpack.c.bf16 %v69_v7, %v68_v6  ;;  %v70_v9 = vld [vmem:[#allocation2 + $0x20] sm:$0xff]  ;;  %v71_v10 = vld [vmem:[#allocation2 + $0x28] sm:$0xff]  ;;  %v72_v13 = vld [vmem:[#allocation2 + $0x30] sm:$0xff]  ;;  %236 = vmatprep.mubr.msk.f32.mxu0 %vm332_vm0, %v333_v15  ;;  %v43_v30 = vshrl.u32 %v42_v29, 7  ;;  %vm168_vm1 = vcmask 89088  }
  0x16   :  { %v246_v12 = vpack.c.bf16 %v71_v10, %v70_v9  ;;  %v73_v14 = vld [vmem:[#allocation2 + $0x38] sm:$0xff]  ;;  %v74_v17 = vld [vmem:[#allocation2 + $0x40] sm:$0xff]  ;;  %v75_v18 = vld [vmem:[#allocation2 + $0x48] sm:$0xff] }
  0x17   :  { %241 = vmatpush3.bf16.msra.mxu0 %v240_v5  ;;  %v249_v16 = vpack.c.bf16 %v73_v14, %v72_v13  ;;  %v252_v19 = vpack.c.bf16 %v75_v18, %v74_v17  ;;  %v76_v20 = vld [vmem:[#allocation2 + $0x50] sm:$0xff]  ;;  %v77_v21 = vld [vmem:[#allocation2 + $0x58] sm:$0xff]  ;;  %v78_v23 = vld [vmem:[#allocation2 + $0x60] sm:$0xff]  ;;  %v44_v31 = vsub.s32 0, %v43_v30  ;;  %v53_v32 = vsub.s32 1, %v43_v30 }
  0x18   :  { %242 = vmatprep.subr.bf16.mxu0 %v330_v1  ;;  %v255_v22 = vpack.c.bf16 %v77_v21, %v76_v20  ;;  %v79_v24 = vld [vmem:[#allocation2 + $0x68] sm:$0xff]  ;;  %v80_v26 = vld [vmem:[#allocation2 + $0x70] sm:$0xff]  ;;  %v81_v27 = vld [vmem:[#allocation2 + $0x78] sm:$0xff] }
  0x19   :  { %273 = vset.pattern.permute.xlu0 %v331_v11  ;;  %v258_v25 = vpack.c.bf16 %v79_v24, %v78_v23  ;;  %v261_v28 = vpack.c.bf16 %v81_v27, %v80_v26  ;;  %v36_v33 = vld [vmem:[%s402_s1] sm:$0x3]  ;;  %s334_s1 = smov [#allocation5]  }
  0x1a   :  { %48 = vperm.xlu0 %273, %v35_v2   ;;  %v45_v35 = vrot.slane %v36_v33, %v44_v31  ;;  %v54_v36 = vrot.slane %v36_v33, %v53_v32  ;;  %v185_v40 = vld [vmem:[%s403_s2] ss:$0 sm:$0xff]  ;;  %s176_s2 = sshll.u32 %s334_s1, 4  ;;  %s177_s2 = int_to_ptr.vmem [resolvable:$true] %s176_s2 }
  0x1b   :  { %244 = vmatpush3.bf16.msra.mxu0 %v243_v8  ;;  %v186_v44 = vld [vmem:[%s405_s4] ss:$0 sm:$0xff]  ;;  %s300_s4 = scalar_lea.vmem %s177_s2, 128  ;;  %p305_p9 = scmp.lt.s32.totalorder %s177_s2, %s177_s2 }
  0x1c   :  { %245 = vmatprep.subr.bf16.mxu0 %v330_v1  ;;  %p301_p8 = scmp.ne.s32.totalorder %s177_s2, %s300_s4  ;;  %p306_p10 = scmp.lt.s32.totalorder %s300_s4, %s300_s4 }
  0x1e   :  { %p307_p11 = por %p306_p10, %p305_p9 }
  0x1f   :  { %247 = vmatpush3.bf16.msra.mxu0 %v246_v12 }
  0x20   :  { %248 = vmatprep.subr.bf16.mxu0 %v330_v1  ;;  %p308_p12 = pnand %p307_p11, %p301_p8 }
  0x23   :  { %250 = vmatpush3.bf16.msra.mxu0 %v249_v16 }
  0x24   :  { %251 = vmatprep.subr.bf16.mxu0 %v330_v1 }
  0x27   :  { %253 = vmatpush3.bf16.msra.mxu0 %v252_v19 }
  0x28   :  { %254 = vmatprep.subr.bf16.mxu0 %v330_v1 }
  0x2b   :  { %256 = vmatpush3.bf16.msra.mxu0 %v255_v22 }
  0x2c   :  { %257 = vmatprep.subr.bf16.mxu0 %v330_v1 }
  0x2f   :  { %259 = vmatpush3.bf16.msra.mxu0 %v258_v25 }
  0x30   :  { %260 = vmatprep.subr.bf16.mxu0 %v330_v1 }
  0x33   :  { %262 = vmatpush3.bf16.msra.mxu0 %v261_v28 }
  0x94   :  { %v40_v34 = vpop.permute.xlu0 %39 }
  0x95   :  { %v46_v38 = vmul.f32 %v45_v35, %v40_v34 }
  0x99   :  { %v49_v37 = vpop.permute.xlu0 %48 }
  0x9a   :  { %v55_v39 = vmul.f32 %v54_v36, %v49_v37 }
  0x9c   :  { %v56_v41 = vadd.f32 %v55_v39, %v46_v38 }
  0x9e   :  { %v64_v42 = vadd.f32 %v185_v40, %v56_v41 }
  0xa0   :  { %v65_v43 = vmax.f32 %v64_v42, 0.0 }
  0xa2   :  { %237 = vmatmul.mubr.f32.vlgmr.msra.gmra.mrb[0].mxu0 %v65_v43 }
 0x175   :  { %v155_v45 = vpop.f32.mrb[0].mxu0 }
 0x176   :  { %v156_v46 = vadd.f32 %v186_v44, %v155_v45  ;;  %v238_v47 = vpop.f32.mrb[1].mxu0 }
 0x178   :  { %159 = vmax.xlane.f32.xlu1 %v156_v46 }
 0x205   :  { %v160_v48 = vpop.xlane.xlu1 %159 }
 0x206   :  { %v161_v49 = vsub.f32 %v156_v46, %v160_v48 }
 0x208   :  { %v162_v50 = vmul.f32 1.442695, %v161_v49 }
 0x20a   :  { %274 = vpow2.f32 %v162_v50 }
 0x214   :  { %v275_v51 = vpop.eup %274 }
 0x215   :  { %164 = vadd.xlane.f32.xlu1 %v275_v51 }
 0x2a2   :  { %v165_v52 = vpop.xlane.xlu1 %164 }
 0x2a3   :  { %276 = vrcp.f32 %v165_v52 }
 0x2ad   :  { %v277_v53 = vpop.eup %276 }
 0x2ae   :  { %v167_v54 = vmul.f32 %v277_v53, %v275_v51 }
 0x2b0   :  { %169 = vst.msk [vmem:[#allocation5] sm:$0xff] %vm168_vm1, %v167_v54 }
 0x2b1   :  { %311 = shalt.err (!%p308_p12)
}
 0x2b2   :  { %s312_s15 = scalar_lea.hbm %s406_s5, 128 }
 0x2b3   :  { %p313_p13 = scmp.ne.s32.totalorder %s406_s5, %s312_s15  ;;  %p316_p0 = scmp.lt.u32.totalorder %s312_s15, %s406_s5 }
 0x2b5   :  { %p318_p1 = pnand %p316_p0, %p313_p13 }
 0x2b7   :  { %321 = shalt.err (!%p318_p1)
}
 0x2b8   :  { %179 = dma.vmem_to_hbm [thread:$0]  %s177_s2, 128, %s406_s5, [#allocation4]  }
 0x2b9   :  { %324 = dma.done.wait [#allocation4], 128  }
 0x2ba   :  { %325 = vsyncadd [#allocation4], 4294967168 }
 0x2bb   :  { %183 = vsyncpa [#allocation3], 1 }
 0x2bc   :  { %184 = vsyncpa [#allocation4], 1 }

</bundles_post_ra>
